<compile_context>
chip_gen: v7x
topology: tpu7x:2x2x1
jax: 0.10.0
libtpu: 0.0.40
codegen_flags: <defaults>
</compile_context>

<pallas_src>
import functools

import jax
import jax.numpy as jnp
from jax.experimental import pallas as pl
from jax.experimental.pallas import tpu as pltpu


# --------------------------------------------------------------------------
# Kernel body
# --------------------------------------------------------------------------
def _swish_kernel(x_ref, o_ref, *, approx_recip: bool):
    x = x_ref[...]
    xf = x.astype(jnp.float32)
    if approx_recip:
        # One EUP exp + near-free vrcp; ample precision for 16-bit outputs.
        s = pl.reciprocal(1.0 + jnp.exp(-xf), approx=True)
    else:
        # Exact sigmoid for f32 callers (and v5e, which has no bf16 VPU/EUP).
        s = jax.nn.sigmoid(xf)
    o_ref[...] = (xf * s).astype(o_ref.dtype)


# --------------------------------------------------------------------------
# Tiling configuration
# --------------------------------------------------------------------------
_TARGET_BLOCK_BYTES = 4 * 1024 * 1024   # per-operand block size
_VMEM_LIMIT_BYTES = 32 * 1024 * 1024    # explicit; <= physical on v5e/v6e/v7x
_MIN_SPLIT_BYTES = 2 * 1024 * 1024      # split anything bigger than this
_MIN_GRID_STEPS = 8                     # desired steps for large tensors


def _sublane_multiple(dtype) -> int:
    # f32 -> 8 sublanes, bf16/f16 -> 16, int8/fp8 -> 32.
    itemsize = jnp.dtype(dtype).itemsize
    return max(8, 32 // max(1, itemsize))


def _cost(n: int, itemsize: int) -> pl.CostEstimate:
    return pl.CostEstimate(
        flops=4 * n, transcendentals=n, bytes_accessed=2 * n * itemsize)


def _compiler_params() -> pltpu.CompilerParams:
    return pltpu.CompilerParams(
        # Lets v7x shard the grid axis across its 2 TensorCores; harmless
        # no-op on single-TC v5e/v6e.
        dimension_semantics=("parallel",),
        vmem_limit_bytes=_VMEM_LIMIT_BYTES,
    )


# --------------------------------------------------------------------------
# 2D fast path: flat size divisible by 128
# --------------------------------------------------------------------------
def _swish_2d(x2d: jnp.ndarray) -> jnp.ndarray:
    rows, lanes = x2d.shape
    dtype = x2d.dtype
    itemsize = jnp.dtype(dtype).itemsize
    row_bytes = lanes * itemsize
    total_bytes = rows * row_bytes
    sub = _sublane_multiple(dtype)

    # Block rows sized for ~4 MiB blocks, rounded to a sublane multiple.
    tile_rows = max(1, _TARGET_BLOCK_BYTES // row_bytes)
    tile_rows = max(sub, (tile_rows // sub) * sub)

    # Keep enough grid steps for pipelining + v7x dual-TC sharding.
    if total_bytes >= _MIN_SPLIT_BYTES and rows > sub:
        want = (_MIN_GRID_STEPS
                if total_bytes >= _MIN_GRID_STEPS * _MIN_SPLIT_BYTES else 2)
        cap = max(sub, (rows // (want * sub)) * sub)
        tile_rows = min(tile_rows, cap)

    if tile_rows >= rows:
        tile_rows = rows  # single full block; only hit for small arrays

    grid = (pl.cdiv(rows, tile_rows),)
    kernel = functools.partial(_swish_kernel, approx_recip=itemsize < 4)

    return pl.pallas_call(
        kernel,
        out_shape=jax.ShapeDtypeStruct((rows, lanes), dtype),
        grid=grid,
        in_specs=[pl.BlockSpec((tile_rows, lanes), lambda i: (i, 0))],
        out_specs=pl.BlockSpec((tile_rows, lanes), lambda i: (i, 0)),
        compiler_params=_compiler_params(),
        cost_estimate=_cost(rows * lanes, itemsize),
    )(x2d)


# --------------------------------------------------------------------------
# 1D fallback: flat size NOT divisible by 128 (Pallas masks the partial
# last block -- no host-side pad / slice HBM round-trips).
# --------------------------------------------------------------------------
def _swish_1d(x_flat: jnp.ndarray) -> jnp.ndarray:
    (n,) = x_flat.shape
    dtype = x_flat.dtype
    itemsize = jnp.dtype(dtype).itemsize
    total_bytes = n * itemsize

    # Block is a multiple of 8*128 elements, ~4 MiB.
    blk = max(1024, (_TARGET_BLOCK_BYTES // itemsize // 1024) * 1024)
    if total_bytes >= _MIN_SPLIT_BYTES:
        want = (_MIN_GRID_STEPS
                if total_bytes >= _MIN_GRID_STEPS * _MIN_SPLIT_BYTES else 2)
        blk = min(blk, max(1024, (n // (want * 1024)) * 1024))
    if blk >= n:
        blk = n  # full-extent block is always a legal block shape

    grid = (pl.cdiv(n, blk),)
    kernel = functools.partial(_swish_kernel, approx_recip=itemsize < 4)

    return pl.pallas_call(
        kernel,
        out_shape=jax.ShapeDtypeStruct((n,), dtype),
        grid=grid,
        in_specs=[pl.BlockSpec((blk,), lambda i: (i,))],
        out_specs=pl.BlockSpec((blk,), lambda i: (i,)),
        compiler_params=_compiler_params(),
        cost_estimate=_cost(n, itemsize),
    )(x_flat)


# --------------------------------------------------------------------------
# Public entry point
# --------------------------------------------------------------------------
def _pick_lanes(n: int):
    """Widest multiple of 128 (<= 8192) that divides n, or None."""
    if n == 0 or n % 128 != 0:
        return None
    m = n // 128
    for k in range(min(64, m), 0, -1):
        if m % k == 0:
            return 128 * k
    return 128


def swish(x: jnp.ndarray) -> jnp.ndarray:
    """Elementwise swish (x * sigmoid(x)) for an arbitrary-shaped array."""
    orig_shape = x.shape
    n = x.size
    if n == 0:
        return x

    lanes = _pick_lanes(n)
    if lanes is not None:
        # Copy-less metadata reshape to a lane-dense 2D slab.
        y = _swish_2d(x.reshape(n // lanes, lanes))
    else:
        y = _swish_1d(x.reshape(n))
    return y.reshape(orig_shape)


if __name__ == "__main__":
    key = jax.random.PRNGKey(0)
    # NCHW input, matching the PyTorch module's typical usage.
    x = jax.random.normal(key, (2, 4, 16, 16), dtype=jnp.float32)

    y = swish(x)
    jax.block_until_ready(y)
    y_ref = x * jax.nn.sigmoid(x)
    assert y.shape == x.shape and y.dtype == x.dtype
    assert jnp.allclose(y, y_ref, atol=1e-6, rtol=1e-6)

    # bf16 path (exercises the single-EUP exp + approx-reciprocal variant).
    xb = x.astype(jnp.bfloat16)
    yb = swish(xb)
    jax.block_until_ready(yb)
    xb_f32 = xb.astype(jnp.float32)
    yb_ref = xb_f32 * jax.nn.sigmoid(xb_f32)
    assert yb.shape == xb.shape and yb.dtype == jnp.bfloat16
    assert jnp.allclose(yb.astype(jnp.float32), yb_ref, atol=3e-2, rtol=3e-2)

    # Non-128-divisible shape: direct 1D pallas_call fallback (no padding).
    x_odd = jax.random.normal(jax.random.PRNGKey(0), (3, 5, 7), dtype=jnp.float32)
    y_odd = swish(x_odd)
    jax.block_until_ready(y_odd)
    assert jnp.allclose(y_odd, x_odd * jax.nn.sigmoid(x_odd), atol=1e-6, rtol=1e-6)

    print("KERNEL_OK")
</pallas_src>

<mosaic_0001>
module attributes {stable_mosaic.version = 11 : i64} {
  func.func @_swish_kernel(%arg0: i32, %arg1: memref<1x2048xf32, #tpu.memory_space<vmem>>, %arg2: memref<1x2048xf32, #tpu.memory_space<vmem>>) attributes {dimension_semantics = [#tpu.dimension_semantics<parallel>], iteration_bounds = array<i64: 1>, scalar_prefetch = 0 : i64, scratch_operands = 0 : i64, tpu.core_type = #tpu.core_type<tc>, window_params = [{transform_indices = @transform_0, window_bounds = array<i64: 1, 2048>}, {transform_indices = @transform_1, window_bounds = array<i64: 1, 2048>}]} {
    %c0 = arith.constant 0 : index
    %c0_0 = arith.constant 0 : index
    %0 = vector.load %arg1[%c0, %c0_0] : memref<1x2048xf32, #tpu.memory_space<vmem>>, vector<1x2048xf32>
    %1 = arith.negf %0 : vector<1x2048xf32>
    %2 = math.exp %1 : vector<1x2048xf32>
    %cst = arith.constant 1.000000e+00 : f32
    %3 = vector.broadcast %cst : f32 to vector<1x2048xf32>
    %4 = arith.addf %3, %2 : vector<1x2048xf32>
    %5 = arith.divf %3, %4 : vector<1x2048xf32>
    %6 = arith.mulf %0, %5 : vector<1x2048xf32>
    %c0_1 = arith.constant 0 : index
    %c0_2 = arith.constant 0 : index
    %7 = vector.load %arg2[%c0_1, %c0_2] : memref<1x2048xf32, #tpu.memory_space<vmem>>, vector<1x2048xf32>
    tpu.vector_store %arg2[%c0_1, %c0_2], %6 {strides = array<i32>} : memref<1x2048xf32, #tpu.memory_space<vmem>>, vector<1x2048xf32>,
    return
  }
  func.func @transform_0(%arg0: i32) -> (i32, i32) {
    %c0_i32 = arith.constant 0 : i32
    %c0_i32_0 = arith.constant 0 : i32
    return %arg0, %c0_i32 : i32, i32
  }
  func.func @transform_1(%arg0: i32) -> (i32, i32) {
    %c0_i32 = arith.constant 0 : i32
    %c0_i32_0 = arith.constant 0 : i32
    return %arg0, %c0_i32 : i32, i32
  }
}

</mosaic_0001>

<bundles_post_ra>
// kernel: tpu_custom_call.1
= control target key start
LH: loop header
LB: loop body
LE: loop exit
PB: predicated region body
PF: predicated region fallthrough
CT: control target
= control target key end

     0   :  { %6 = vsyncpa [#allocation3], 0  ;;  %s150_s0 = inlined_call_operand.hbm [shape: f32[1,2048], index: 0, kind: input, shape index: {}]   ;;  %s151_s1 = inlined_call_operand.hbm [shape: f32[1,2048], index: 1, kind: output, shape index: {}]  }
   0x1   :  { %7 = vsyncpa [#allocation4], 0  ;;  %s114_s6 = smov [#allocation2]   ;;  %s66_s10 = scalar_lea.hbm %s150_s0, 256 }
   0x2   :  { %s14_s7 = sshll.u32 %s114_s6, 4  ;;  %p67_p0 = scmp.ne.s32.totalorder %s150_s0, %s66_s10  ;;  %s15_s7 = int_to_ptr.vmem [resolvable:$true] %s14_s7 }
   0x3   :  { %p70_p1 = scmp.lt.u32.totalorder %s66_s10, %s150_s0 }
   0x5   :  { %p72_p2 = pnand %p70_p1, %p67_p0 }
   0x7   :  { %75 = shalt.err (!%p72_p2)
}
   0x8   :  { %s76_s15 = scalar_lea.vmem %s15_s7, 256  ;;  %p81_p4 = scmp.lt.s32.totalorder %s15_s7, %s15_s7 }
   0x9   :  { %p77_p3 = scmp.ne.s32.totalorder %s15_s7, %s76_s15  ;;  %p82_p5 = scmp.lt.s32.totalorder %s76_s15, %s76_s15 }
   0xb   :  { %p83_p6 = por %p82_p5, %p81_p4 }
   0xd   :  { %p84_p7 = pnand %p83_p6, %p77_p3 }
   0xf   :  { %87 = shalt.err (!%p84_p7)
}
  0x10   :  { %17 = dma.hbm_to_vmem [thread:$0]  %s150_s0, 256, %s15_s7, [#allocation3]  }
  0x11   :  { %110 = dma.done.wait [#allocation3], 256  }
  0x12   :  { %111 = vsyncadd [#allocation3], 4294967040  ;;  %v21_v0 = vld [vmem:[#allocation2] sm:$0xff]  ;;  %v22_v1 = vld [vmem:[#allocation2 + $0x8] sm:$0xff]  ;;  %s115_s18 = smov [#allocation5]  }
  0x13   :  { %v54_v2 = vmul.f32 -1.442695, %v21_v0  ;;  %v55_v3 = vmul.f32 -1.442695, %v22_v1  ;;  %s45_s19 = sshll.u32 %s115_s18, 4  ;;  %s46_s19 = int_to_ptr.vmem [resolvable:$true] %s45_s19 }
  0x14   :  { %s88_s0 = scalar_lea.vmem %s46_s19, 256  ;;  %p93_p9 = scmp.lt.s32.totalorder %s46_s19, %s46_s19 }
  0x15   :  { %58 = vpow2.f32 %v54_v2  ;;  %p89_p8 = scmp.ne.s32.totalorder %s46_s19, %s88_s0  ;;  %p94_p10 = scmp.lt.s32.totalorder %s88_s0, %s88_s0 }
  0x16   :  { %60 = vpow2.f32 %v55_v3 }
  0x17   :  { %p95_p11 = por %p94_p10, %p93_p9 }
  0x19   :  { %p96_p12 = pnand %p95_p11, %p89_p8 }
  0x1f   :  { %v59_v4 = vpop.eup %58 }
  0x20   :  { %v61_v5 = vpop.eup %60  ;;  %v29_v6 = vadd.f32 1.0, %v59_v4 }
  0x21   :  { %v30_v7 = vadd.f32 1.0, %v61_v5 }
  0x22   :  { %62 = vrcp.f32 %v29_v6 }
  0x23   :  { %64 = vrcp.f32 %v30_v7 }
  0x2c   :  { %v63_v8 = vpop.eup %62 }
  0x2d   :  { %v65_v9 = vpop.eup %64  ;;  %v35_v10 = vmul.f32 %v63_v8, %v21_v0 }
  0x2e   :  { %v36_v11 = vmul.f32 %v65_v9, %v22_v1 }
  0x2f   :  { %37 = vst [vmem:[#allocation5] sm:$0xff] %v35_v10 }
  0x30   :  { %38 = vst [vmem:[#allocation5 + $0x8] sm:$0xff] %v36_v11 }
  0x31   :  { %99 = shalt.err (!%p96_p12)
}
  0x32   :  { %s100_s22 = scalar_lea.hbm %s151_s1, 256 }
  0x33   :  { %p101_p13 = scmp.ne.s32.totalorder %s151_s1, %s100_s22  ;;  %p104_p0 = scmp.lt.u32.totalorder %s100_s22, %s151_s1 }
  0x35   :  { %p106_p1 = pnand %p104_p0, %p101_p13 }
  0x37   :  { %109 = shalt.err (!%p106_p1)
}
  0x38   :  { %48 = dma.vmem_to_hbm [thread:$0]  %s46_s19, 256, %s151_s1, [#allocation4]  }
  0x39   :  { %112 = dma.done.wait [#allocation4], 256  }
  0x3a   :  { %113 = vsyncadd [#allocation4], 4294967040 }
  0x3b   :  { %52 = vsyncpa [#allocation3], 1 }
  0x3c   :  { %53 = vsyncpa [#allocation4], 1 }

</bundles_post_ra>
